<compile_context>
chip_gen: v7x
topology: tpu7x:2x2x1
jax: 0.10.0
libtpu: 0.0.40
codegen_flags: <defaults>
</compile_context>

<pallas_src>
import jax
import jax.numpy as jnp
from jax.experimental import pallas as pl
from jax.experimental.pallas import tpu as pltpu


def _subsample_kernel(x_ref, o_ref):
    # x_ref: (Tr, res_out, C)         when the column stride is in the BlockSpec
    #        (Tr, res_out, stride*C)  when the full column group is read
    # o_ref: (Tr, res_out, C)
    # Keeping the leading C lanes is the column subsample (channels of the
    # column-group element 0); when shapes already match it is an identity slice.
    c = o_ref.shape[-1]
    o_ref[...] = x_ref[...][:, :, :c]


def _choose_row_tile(res_out, row_group_bytes, batch):
    """Largest divisor of res_out keeping blocks <= ~2 MiB, with >=2 grid steps."""
    divisors = [d for d in range(1, res_out + 1) if res_out % d == 0]
    tile = 1
    for d in divisors:
        if d * row_group_bytes <= (2 << 20):
            tile = d
    # Ensure the grid has at least 2 steps so v7x's two TensorCores and the
    # software pipeline have work even at batch == 1.
    if batch * (res_out // tile) < 2:
        smaller = [d for d in divisors if d < tile]
        if smaller:
            tile = smaller[-1]
    return tile


def subsample(x, stride, resolution):
    """Pallas equivalent of Subsample(stride, resolution).forward(x)."""
    B, N, C = x.shape
    assert N == resolution * resolution, "N must equal resolution**2"
    if stride == 1:
        return x  # [:, ::1, ::1] is the identity

    res_out = len(range(0, resolution, stride))   # ceil(resolution / stride)
    res_pad = res_out * stride
    itemsize = jnp.dtype(x.dtype).itemsize

    x4 = x.reshape(B, resolution, resolution, C)
    if res_pad != resolution:
        # Non-divisible resolution: pad so the grouped (res_out, stride) view
        # exists.  Element 0 of every group is always original data.
        pad = res_pad - resolution
        x4 = jnp.pad(x4, ((0, 0), (0, pad), (0, pad), (0, 0)))

    # Grouped view: rows split into (res_out, stride), columns+channels folded
    # into a single trailing axis of size stride*C.
    x_in = x4.reshape(B, res_out, stride, res_out, stride * C)

    lane_aligned = (C % 128 == 0)
    # Lane-aligned C: column stride is also folded into the BlockSpec (DMA
    # reads exactly the output elements).  Small C: read the whole column
    # group and slice in-kernel (each DMA chunk stays contiguous).
    last_block_c = C if lane_aligned else stride * C

    row_group_bytes = res_out * last_block_c * itemsize
    tr = _choose_row_tile(res_out, row_group_bytes, B)

    in_spec = pl.BlockSpec(
        (pl.Squeezed(), tr, pl.Squeezed(), res_out, last_block_c),
        lambda b, r: (b, r, 0, 0, 0),
    )
    out_spec = pl.BlockSpec(
        (pl.Squeezed(), tr, res_out, C),
        lambda b, r: (b, r, 0, 0),
    )

    bytes_in = B * res_out * res_out * last_block_c * itemsize
    bytes_out = B * res_out * res_out * C * itemsize

    # Raise the scoped VMEM limit only when the double-buffered blocks need it
    # (v5e default scoped limit is 16 MiB); cap at 48 MiB for v7x headroom.
    in_block_bytes = tr * row_group_bytes
    out_block_bytes = tr * res_out * C * itemsize
    needed = 2 * (in_block_bytes + out_block_bytes) + (2 << 20)
    compiler_kwargs = {"dimension_semantics": ("parallel", "parallel")}
    if needed > (16 << 20):
        compiler_kwargs["vmem_limit_bytes"] = min(needed, 48 << 20)

    out4 = pl.pallas_call(
        _subsample_kernel,
        out_shape=jax.ShapeDtypeStruct((B, res_out, res_out, C), x.dtype),
        grid=(B, res_out // tr),
        in_specs=[in_spec],
        out_specs=out_spec,
        compiler_params=pltpu.CompilerParams(**compiler_kwargs),
        cost_estimate=pl.CostEstimate(
            flops=0, transcendentals=0, bytes_accessed=bytes_in + bytes_out),
    )(x_in)

    return out4.reshape(B, res_out * res_out, C)


def _reference(x, stride, resolution):
    B, N, C = x.shape
    return (
        x.reshape(B, resolution, resolution, C)[:, ::stride, ::stride]
        .reshape(B, -1, C)
    )


if __name__ == "__main__":
    # Primary config consistent with the module: resolution=16 -> N=256 tokens.
    B, resolution, C, stride = 2, 16, 32, 2
    key = jax.random.PRNGKey(0)
    x = jax.random.normal(key, (B, resolution * resolution, C), dtype=jnp.float32)

    y = jax.block_until_ready(subsample(x, stride, resolution))
    y_ref = _reference(x, stride, resolution)
    assert y.shape == y_ref.shape, (y.shape, y_ref.shape)
    assert jnp.array_equal(y, y_ref), "Pallas subsample mismatch (small-C path)"

    # Lane-aligned-C path: column stride fully folded into the BlockSpec.
    x2 = jax.random.normal(jax.random.PRNGKey(1), (2, 8 * 8, 128), dtype=jnp.float32)
    y2 = jax.block_until_ready(subsample(x2, 2, 8))
    assert jnp.array_equal(y2, _reference(x2, 2, 8)), "mismatch (lane-aligned path)"

    # Non-divisible resolution: padded grouped view.
    x3 = jax.random.normal(jax.random.PRNGKey(2), (2, 7 * 7, 32), dtype=jnp.float32)
    y3 = jax.block_until_ready(subsample(x3, 2, 7))
    assert jnp.array_equal(y3, _reference(x3, 2, 7)), "mismatch (non-divisible path)"

    print("KERNEL_OK")
</pallas_src>

<mosaic_0001>
module attributes {stable_mosaic.version = 11 : i64} {
  func.func @_subsample_kernel(%arg0: i32, %arg1: i32, %arg2: memref<1x8x1x8x64xf32, #tpu.memory_space<vmem>>, %arg3: memref<1x8x8x32xf32, #tpu.memory_space<vmem>>) attributes {dimension_semantics = [#tpu.dimension_semantics<parallel>, #tpu.dimension_semantics<parallel>], iteration_bounds = array<i64: 2, 1>, scalar_prefetch = 0 : i64, scratch_operands = 0 : i64, tpu.core_type = #tpu.core_type<tc>, window_params = [{transform_indices = @transform_0, window_bounds = array<i64: 1, 8, 1, 8, 64>}, {transform_indices = @transform_1, window_bounds = array<i64: 1, 8, 8, 32>}]} {
    %c0 = arith.constant 0 : index
    %c0_0 = arith.constant 0 : index
    %c0_1 = arith.constant 0 : index
    %c0_2 = arith.constant 0 : index
    %c0_3 = arith.constant 0 : index
    %0 = vector.load %arg2[%c0, %c0_0, %c0_1, %c0_2, %c0_3] : memref<1x8x1x8x64xf32, #tpu.memory_space<vmem>>, vector<1x8x1x8x64xf32>
    %1 = vector.shape_cast %0 : vector<1x8x1x8x64xf32> to vector<8x8x64xf32>
    %2 = vector.extract_strided_slice %1 {offsets = [0, 0, 0], sizes = [8, 8, 32], strides = [1, 1, 1]} : vector<8x8x64xf32> to vector<8x8x32xf32>
    %c0_4 = arith.constant 0 : index
    %c0_5 = arith.constant 0 : index
    %c0_6 = arith.constant 0 : index
    %c0_7 = arith.constant 0 : index
    %3 = vector.load %arg3[%c0_4, %c0_5, %c0_6, %c0_7] : memref<1x8x8x32xf32, #tpu.memory_space<vmem>>, vector<1x8x8x32xf32>
    %4 = vector.shape_cast %3 : vector<1x8x8x32xf32> to vector<8x8x32xf32>
    %5 = vector.shape_cast %2 : vector<8x8x32xf32> to vector<1x8x8x32xf32>
    tpu.vector_store %arg3[%c0_4, %c0_5, %c0_6, %c0_7], %5 {strides = array<i32>} : memref<1x8x8x32xf32, #tpu.memory_space<vmem>>, vector<1x8x8x32xf32>,
    return
  }
  func.func @transform_0(%arg0: i32, %arg1: i32) -> (i32, i32, i32, i32, i32) {
    %c0_i32 = arith.constant 0 : i32
    %c0_i32_0 = arith.constant 0 : i32
    %c0_i32_1 = arith.constant 0 : i32
    %c0_i32_2 = arith.constant 0 : i32
    return %arg0, %arg1, %c0_i32, %c0_i32_0, %c0_i32_1 : i32, i32, i32, i32, i32
  }
  func.func @transform_1(%arg0: i32, %arg1: i32) -> (i32, i32, i32, i32) {
    %c0_i32 = arith.constant 0 : i32
    %c0_i32_0 = arith.constant 0 : i32
    %c0_i32_1 = arith.constant 0 : i32
    return %arg0, %arg1, %c0_i32, %c0_i32_0 : i32, i32, i32, i32
  }
}

</mosaic_0001>

<bundles_post_ra>
// kernel: tpu_custom_call.1
= control target key start
LH: loop header
LB: loop body
LE: loop exit
PB: predicated region body
PF: predicated region fallthrough
CT: control target
= control target key end

     0   :  { %6 = vsyncpa [#allocation3], 0  ;;  %s672_s0 = inlined_call_operand.hbm [shape: f32[2,8,2,8,64], index: 0, kind: input, shape index: {}]   ;;  %s673_s1 = inlined_call_operand.hbm [shape: f32[2,8,8,32], index: 1, kind: output, shape index: {}]  }
   0x1   :  { %8 = vsyncpa [#allocation3 + $0x1], 0 }
   0x2   :  { %9 = vsyncpa [#allocation4], 0 }
   0x3   :  { %11 = vsyncpa [#allocation4 + $0x1], 0  ;;  %s491_s6 = smov 0   ;;  %s493_s7 = smov 0  }
   0x4   :  { %s495_s8 = smov 0   ;;  %s497_s9 = smov 0  }
   0x5   :  { %s499_s10 = smov 0   ;;  %s501_s11 = smov 0  }
   0x6 LB: > { %s276_s12 = sadd.s32 4294967295, %s472_s11   ;;  %s277_s13 = sadd.s32 4294967294, %s472_s11   ;;  %s472_s11 = sphi %s501_s11, %s17_s11   ;;  %s468_s10 = sphi %s499_s10, %s687_s10   ;;  %s464_s9 = sphi %s497_s9, %s686_s9   ;;  %s460_s8 = sphi %s495_s8, %s685_s8   ;;  %s456_s7 = sphi %s493_s7, %s684_s7   ;;  %s452_s6 = sphi %s491_s6, %s683_s6  }
   0x7   : > { %s29_s14 = sadd.s32 1, %s468_s10  ;;  %s38_s15 = sadd.s32 1, %s460_s8 }
   0x8   : > { %p31_p0 = scmp.ge.s32.totalorder %s29_s14, 2  ;;  %p45_p1 = scmp.ne.s32.totalorder %s460_s8, %s456_s7 }
   0x9   : > { %p46_p2 = scmp.eq.s32.totalorder %s472_s11, 0  ;;  %p51_p3 = scmp.ne.s32.totalorder %s456_s7, %s452_s6 }
   0xa   : > { %s689_s14 = smov (%p31_p0, %s29_s14), 0  ;;  %p52_p5 = scmp.eq.s32.totalorder %s276_s12, 0 }
   0xb   : > { %p532_p4 = por %p46_p2, %p45_p1  ;;  %s33_s17 = ssub.s32 %s468_s10, %s689_s14 }
   0xc   : > { %p77_p6 = scmp.eq.s32.totalorder %s276_s12, 1  ;;  %p36_p7 = scmp.eq.s32.totalorder %s33_s17, 0 }
   0xd   : > { %p538_p8 = por %p52_p5, %p51_p3  ;;  %p83_p10 = scmp.eq.s32.totalorder %s277_s13, 1 }
   0xe   : > { %p542_p9 = por %p77_p6, %p45_p1  ;;  %p305_p13 = scmp.lt.s32.totalorder %s472_s11, 2 }
   0xf   : > { %s547_s20 = scalar_select %p36_p7, %s460_s8, %s38_s15  }
  0x10   : > { %s677_s19 = scalar_select %p542_p9, 1, 0 }
  0x11   : > { %p549_p11 = por %p83_p10, %p51_p3  ;;  %s103_s22 = sand.u32 1, %s460_s8  }
  0x12   : > { %s280_s23 = sshll.u32 %s103_s22, 6  ;;  %s291_s24 = sshll.u32 %s468_s10, 11 }
  0x13   : > { %s678_s21 = scalar_select %p549_p11, 1, 0 }
  0x14   : > { %s560_s27 = scalar_lea.hbm %s672_s0, %s291_s24  ;;  %s107_s28 = scalar_lea.vmem [#allocation2], %s280_s23 }
  0x15   : > { %s117_s29 = sshll.u32 %s107_s28, 4  ;;  %p566_p0 = pnand %p305_p13, %p532_p4  ;;  %s562_s29 = int_to_ptr.vmem [resolvable:$true] %s117_s29 }
  0x16   : > { %s570_s2 = scalar_lea.sflag [#allocation3], %s103_s22  ;;  %s360_s3 = scalar_lea.hbm %s560_s27, 1024 }
  0x17   : > { %p361_p1 = scmp.ne.s32.totalorder %s560_s27, %s360_s3  ;;  %p362_p2 = pneg %p566_p0 }
  0x18   : > { %s365_s12 = scalar_lea.hbm %s672_s0, 4096  ;;  %p366_p4 = scmp.lt.u32.totalorder %s560_s27, %s672_s0 }
  0x19   : > { %p363_p3 = pnand %p362_p2, %p361_p1  ;;  %p367_p6 = scmp.lt.u32.totalorder %s365_s12, %s360_s3 }
  0x1a   : > { %p369_p10 = scmp.lt.u32.totalorder %s360_s3, %s560_s27 }
  0x1b   : > { %p364_p5 = pneg %p363_p3  ;;  %p368_p7 = por %p367_p6, %p366_p4 }
  0x1d   : > { %p370_p13 = por %p369_p10, %p368_p7 }
  0x1f   : > { %p371_p12 = pnand %p370_p13, %p364_p5 }
  0x21   : > { %374 = shalt.err (!%p371_p12)
}
  0x22   : > { %s375_s16 = scalar_lea.vmem %s562_s29, 1024  ;;  %s474_s17 = smov [#allocation2]  }
  0x23   : > { %p376_p1 = scmp.ne.s32.totalorder %s562_s29, %s375_s16  ;;  %s380_s22 = sshll.u32 %s474_s17, 4  ;;  %s381_s22 = int_to_ptr.vmem [resolvable:$false] %s380_s22 }
  0x24   : > { %s382_s23 = scalar_lea.vmem %s381_s22, 2048  ;;  %p383_p9 = scmp.lt.s32.totalorder %s562_s29, %s381_s22 }
  0x25   : > { %p378_p3 = pnand %p376_p1, %p362_p2  ;;  %p384_p4 = scmp.lt.s32.totalorder %s382_s23, %s375_s16 }
  0x27   : > { %p379_p11 = pneg %p378_p3  ;;  %p385_p6 = por %p384_p4, %p383_p9 }
  0x29   : > { %p386_p7 = pnand %p385_p6, %p379_p11 }
  0x2b   : > { %389 = shalt.err (!%p386_p7)
}
  0x2c   : > { %s475_s24 = smov 256   ;;  %s476_s25 = smov 128  }
  0x2d   : > { %s477_s26 = smov 8   ;;  %p283_p12 = scmp.ge.s32.totalorder %s472_s11, 1 }
  0x2e   : > { %300 = dma.hbm_to_vmem [thread:$0]  (!%p566_p0), %s560_s27, 1024, %s562_s29, %s570_s2, %s475_s24, %s476_s25, %s477_s26  }
  0x2f   : > { %p125_p2 = scmp.lt.s32.totalorder %s472_s11, 3 }
  0x31   : > { %p126_p5 = pnand %p283_p12, %p125_p2 }
  0x32   : > { %s601_s28 = sand.u32 (!%p126_p5), 1, %s456_s7  }
  0x33   : > { %129 = sbr.rel (%p126_p5) target bundleno = 86 (0x56), region = 24  ;;  %s284_s3 = sshll.u32 (!%p126_p5), %s601_s28, 6 }
  0x34   : > { %s132_s4 = scalar_lea.sflag (!%p126_p5), [#allocation3], %s601_s28  ;;  %s135_s5 = scalar_lea.vmem (!%p126_p5), [#allocation2], %s284_s3 }
  0x3a   : > { %443 = dma.done.wait (%p538_p8), %s132_s4, 1024  }
  0x3b   : > { %445 = vsyncadd (%p538_p8), %s132_s4, 4294966272  ;;  %s153_s27 = scalar_lea.vmem [#allocation5], %s284_s3  ;;  %s292_s30 = sshll.u32 %s464_s9, 10  ;;  %vm164_vm0 = vcmask 261120   ;;  %v156_v0 = vld [vmem:[%s135_s5] sm:$0xff]  ;;  %v157_v1 = vld [vmem:[%s135_s5 + $0x8] sm:$0xff] }
  0x3c   : > { %s189_s29 = sshll.u32 %s153_s27, 4  ;;  %v158_v2 = vld [vmem:[%s135_s5 + $0x10] sm:$0xff]  ;;  %s615_s13 = scalar_lea.hbm %s673_s1, %s292_s30  ;;  %165 = vst.msk [vmem:[%s153_s27] sm:$0xff] %vm164_vm0, %v156_v0  ;;  %166 = vst.msk [vmem:[%s153_s27 + $0x8] sm:$0xff] %vm164_vm0, %v157_v1  ;;  %v159_v3 = vld [vmem:[%s135_s5 + $0x18] sm:$0xff]  ;;  %s610_s29 = int_to_ptr.vmem [resolvable:$true] %s189_s29 }
  0x3d   : > { %167 = vst.msk [vmem:[%s153_s27 + $0x10] sm:$0xff] %vm164_vm0, %v158_v2  ;;  %v160_v4 = vld [vmem:[%s135_s5 + $0x20] sm:$0xff]  ;;  %v161_v5 = vld [vmem:[%s135_s5 + $0x28] sm:$0xff]  ;;  %168 = vst.msk [vmem:[%s153_s27 + $0x18] sm:$0xff] %vm164_vm0, %v159_v3  ;;  %s174_s9 = scalar_lea.sflag [#allocation4], %s601_s28  ;;  %s390_s18 = scalar_lea.vmem %s610_s29, 1024 }
  0x3e   : > { %169 = vst.msk [vmem:[%s153_s27 + $0x20] sm:$0xff] %vm164_vm0, %v160_v4  ;;  %170 = vst.msk [vmem:[%s153_s27 + $0x28] sm:$0xff] %vm164_vm0, %v161_v5  ;;  %v162_v6 = vld [vmem:[%s135_s5 + $0x30] sm:$0xff]  ;;  %v163_v7 = vld [vmem:[%s135_s5 + $0x38] sm:$0xff]  ;;  %p391_p8 = scmp.ne.s32.totalorder %s610_s29, %s390_s18  ;;  %p680_p9 = scmp.ne.s32.totalorder %s677_s19, 0 }
  0x3f   : > { %171 = vst.msk [vmem:[%s153_s27 + $0x30] sm:$0xff] %vm164_vm0, %v162_v6  ;;  %172 = vst.msk [vmem:[%s153_s27 + $0x38] sm:$0xff] %vm164_vm0, %v163_v7  ;;  %s478_s15 = smov [#allocation5]  }
  0x40   : > { %p392_p11 = pnand %p391_p8, %p680_p9  ;;  %s394_s16 = sshll.u32 %s478_s15, 4  ;;  %s395_s16 = int_to_ptr.vmem [resolvable:$false] %s394_s16 }
  0x41   : > { %s396_s17 = scalar_lea.vmem %s395_s16, 2048  ;;  %p397_p10 = scmp.lt.s32.totalorder %s610_s29, %s395_s16 }
  0x42   : > { %p393_p0 = pneg %p392_p11  ;;  %p398_p13 = scmp.lt.s32.totalorder %s396_s17, %s390_s18 }
  0x44   : > { %p399_p1 = por %p398_p13, %p397_p10 }
  0x46   : > { %p400_p3 = pnand %p399_p1, %p393_p0 }
  0x48   : > { %403 = shalt.err (!%p400_p3)
}
  0x49   : > { %s404_s22 = scalar_lea.hbm %s615_s13, 1024  ;;  %s408_s25 = scalar_lea.hbm %s673_s1, 2048 }
  0x4a   : > { %p405_p4 = scmp.ne.s32.totalorder %s615_s13, %s404_s22  ;;  %p409_p12 = scmp.lt.u32.totalorder %s615_s13, %s673_s1 }
  0x4b   : > { %p410_p2 = scmp.lt.u32.totalorder %s408_s25, %s404_s22  ;;  %p412_p8 = scmp.lt.u32.totalorder %s404_s22, %s615_s13 }
  0x4c   : > { %p406_p6 = pnand %p405_p4, %p680_p9 }
  0x4d   : > { %p411_p5 = por %p410_p2, %p409_p12 }
  0x4e   : > { %p407_p7 = pneg %p406_p6 }
  0x4f   : > { %p413_p11 = por %p412_p8, %p411_p5 }
  0x51   : > { %p414_p0 = pnand %p413_p11, %p407_p7 }
  0x53   : > { %417 = shalt.err (!%p414_p0)
}
  0x54   : > { %s479_s4 = smov 128   ;;  %s480_s5 = smov 8  }
  0x55   : > { %295 = dma.vmem_to_hbm [thread:$0]  (%p680_p9), %s610_s29, 1024, %s615_s13, %s174_s9, %s479_s4, %s479_s4, %s480_s5  }
  0x56 PF: > { %s204_s27 = sand.u32 1, %s452_s6   ;;  %p681_p10 = scmp.ne.s32.totalorder %s678_s21, 0 }
  0x57   : > { %p682_p13 = scmp.ge.s32.totalorder %s472_s11, 2  ;;  %s205_s30 = scalar_lea.sflag [#allocation4], %s204_s27 }
  0x59   : > { %p302_p1 = pnand %p682_p13, %p681_p10 }
  0x5b   : > { %447 = dma.done.wait (!%p302_p1), %s205_s30, 1024  }
  0x5c   : > { %449 = vsyncadd (!%p302_p1), %s205_s30, 4294966272  ;;  %s17_s11 = sadd.s32 1, %s472_s11   ;;  %s683_s6 = smov %s456_s7 }
  0x5d   : > { %p14_p3 = scmp.ge.s32.totalorder %s17_s11, 4   ;;  %s684_s7 = smov %s460_s8 }
  0x5e   : > { %s685_s8 = smov %s547_s20  ;;  %s686_s9 = smov %s468_s10 }
  0x5f   : > { %s687_s10 = smov %s689_s14  ;;  %16 = sbr.rel (!%p14_p3) target bundleno = 6 (0x6), region = 69 }
  0x66   :  { %210 = vsyncpa [#allocation3], 1 }
  0x67   :  { %212 = vsyncpa [#allocation3 + $0x1], 1 }
  0x68   :  { %213 = vsyncpa [#allocation4], 1 }
  0x69   :  { %215 = vsyncpa [#allocation4 + $0x1], 1 }

</bundles_post_ra>
